<compile_context>
chip_gen: v7x
topology: tpu7x:2x2x1
jax: 0.10.0
libtpu: 0.0.40
codegen_flags: <defaults>
</compile_context>

<pallas_src>
import functools

import jax
import jax.numpy as jnp
from jax.experimental import pallas as pl
from jax.experimental.pallas import tpu as pltpu


def _round_up(n, m):
    return ((n + m - 1) // m) * m


def _pad_to(a, shape):
    return jnp.pad(a, [(0, s - d) for d, s in zip(a.shape, shape)])


def rnn_forward_kernel(x_ref, wih1_ref, whh1_ref, b1_ref,
                       wih2_ref, whh2_ref, b2_ref,
                       wout_ref, bout_ref, o_ref, h2_ref, *, T, B, BP):
    HP = whh1_ref.shape[0]

    # ---- RNN layer 1: input projection hoisted out of the serial recurrence as ONE
    # (T*BP, IP) x (IP, HP) matmul. x2d / wih1 die right after this dot.
    xw = (jnp.dot(x_ref[...], wih1_ref[...], preferred_element_type=jnp.float32)
          + b1_ref[...])                                    # (T*BP, HP)

    whh1 = whh1_ref[...]                                    # live only for this loop
    h = jnp.zeros((BP, HP), jnp.float32)
    acc = jnp.zeros((BP, HP), jnp.float32)                  # online average-pool accum
    for t in range(T):                                      # T small & static -> unrolled
        xw_t = xw[t * BP:(t + 1) * BP, :]                   # static, 8-sublane-aligned
        h = jnp.tanh(xw_t + jnp.dot(h, whh1, preferred_element_type=jnp.float32))
        acc = acc + h
    pooled = acc * (1.0 / T)                                # (BP, HP)
    # NOTE: pooled rows >= B contain tanh(b1)-style padding garbage; layer 2 below only
    # ever consumes rows s < B, and padded output rows are sliced away in the wrapper.
    # Keep it that way if this kernel is edited.

    # ---- Layer-2 / output weights loaded only NOW (keeps peak vreg pressure low).
    u = (jnp.dot(pooled, wih2_ref[...], preferred_element_type=jnp.float32)
         + b2_ref[...])                                     # (BP, HP)
    whh2 = whh2_ref[...]

    # ---- RNN layer 2: recurrence over the batch axis. h2 rows are stashed in VMEM
    # scratch; the Linear(H,1) projection is done ONCE after the loop.
    h2_ref[...] = jnp.zeros((BP, HP), jnp.float32)          # zero padded rows
    h2 = jnp.zeros((1, HP), jnp.float32)
    for s in range(B):                                      # B small & static -> unrolled
        h2 = jnp.tanh(u[s:s + 1, :] +
                      jnp.dot(h2, whh2, preferred_element_type=jnp.float32))
        h2_ref[s:s + 1, :] = h2

    # ---- Output Linear(H, 1): single batched matmul into a lane-dense (BP, 128) tile,
    # one unmasked full-vreg store (real result lives in column 0).
    o_ref[...] = (jnp.dot(h2_ref[...], wout_ref[...],
                          preferred_element_type=jnp.float32) + bout_ref[...])


def prepare_params(params, input_size):
    """One-time padding of weights to lane/sublane-dense shapes (done OUTSIDE the
    per-call forward so the hot path only preps x)."""
    H = params["whh1"].shape[0]
    I = input_size
    HP = _round_up(H, 128)
    IP = _round_up(I, 128)
    OP = 128                                                # lane-dense output width
    f32 = jnp.float32
    return dict(
        wih1=_pad_to(params["wih1"].astype(f32), (IP, HP)),
        whh1=_pad_to(params["whh1"].astype(f32), (HP, HP)),
        b1=_pad_to(params["b1"].astype(f32), (1, HP)),
        wih2=_pad_to(params["wih2"].astype(f32), (HP, HP)),
        whh2=_pad_to(params["whh2"].astype(f32), (HP, HP)),
        b2=_pad_to(params["b2"].astype(f32), (1, HP)),
        wout=_pad_to(params["wout"].astype(f32), (HP, OP)),
        bout=_pad_to(params["bout"].astype(f32), (1, OP)),
    )


@jax.jit
def rnn_forward(x, padded):
    B, T, I = x.shape
    HP = padded["whh1"].shape[0]
    IP = padded["wih1"].shape[0]
    OP = padded["wout"].shape[1]
    BP = _round_up(B, 8)                                    # sublane-dense batch dim

    # Wrapper-side layout plumbing: time-major, zero-padded, 2-D slab (T*BP, IP) so the
    # kernel never slices the middle axis of a 3-D VMEM tile.
    x_tm = jnp.transpose(x.astype(jnp.float32), (1, 0, 2))  # (T, B, I)
    x_tm = jnp.pad(x_tm, ((0, 0), (0, BP - B), (0, IP - I)))
    x2d = x_tm.reshape(T * BP, IP)

    args = (x2d, padded["wih1"], padded["whh1"], padded["b1"],
            padded["wih2"], padded["whh2"], padded["b2"],
            padded["wout"], padded["bout"])
    vmem_spec = pl.BlockSpec(memory_space=pltpu.MemorySpace.VMEM)

    flops = 2 * (T * BP * IP * HP                           # layer-1 input projection
                 + T * BP * HP * HP                         # layer-1 recurrence
                 + BP * HP * HP                             # layer-2 input projection
                 + B * HP * HP                              # layer-2 recurrence
                 + BP * HP * OP)                            # output Linear
    transcendentals = T * BP * HP + B * HP                  # tanh
    bytes_accessed = 4 * (sum(int(a.size) for a in args) + BP * OP)

    kernel = functools.partial(rnn_forward_kernel, T=T, B=B, BP=BP)
    out = pl.pallas_call(
        kernel,
        out_shape=jax.ShapeDtypeStruct((BP, OP), jnp.float32),
        in_specs=[vmem_spec] * len(args),
        out_specs=vmem_spec,
        scratch_shapes=[pltpu.VMEM((BP, HP), jnp.float32)],
        cost_estimate=pl.CostEstimate(flops=flops,
                                      transcendentals=transcendentals,
                                      bytes_accessed=bytes_accessed),
    )(*args)
    return out[:B, :1]                                      # real rows, real column


def ref_forward(x, p):
    """Pure-JAX reference mirroring the PyTorch forward (for correctness check)."""
    B, T, _ = x.shape
    H = p["whh1"].shape[0]
    h = jnp.zeros((B, H), jnp.float32)
    ys = []
    for t in range(T):
        h = jnp.tanh(x[:, t, :] @ p["wih1"] + h @ p["whh1"] + p["b1"])
        ys.append(h)
    seq = jnp.stack(ys, axis=1)                             # (B, T, H)
    pooled = jnp.mean(seq, axis=1)                          # avg_pool2d((T,1)) + squeeze
    h2 = jnp.zeros((1, H), jnp.float32)
    rows = []
    for s in range(B):
        h2 = jnp.tanh(pooled[s:s + 1] @ p["wih2"] + h2 @ p["whh2"] + p["b2"])
        rows.append(h2)
    seq2 = jnp.concatenate(rows, axis=0)
    return seq2 @ p["wout"] + p["bout"]


def init_params(key, input_size, hidden_size):
    ks = jax.random.split(key, 10)
    H, I = hidden_size, input_size
    scale = 1.0 / jnp.sqrt(H)

    def u(k, shape):
        return jax.random.uniform(k, shape, jnp.float32, -scale, scale)

    # PyTorch shapes: weight_ih (H, I), weight_hh (H, H); pass transposed.
    wih1 = u(ks[0], (H, I)).T                               # (I, H)
    whh1 = u(ks[1], (H, H)).T                               # (H, H)
    b1 = (u(ks[2], (H,)) + u(ks[3], (H,))).reshape(1, H)
    wih2 = u(ks[4], (H, H)).T                               # (H, H)
    whh2 = u(ks[5], (H, H)).T                               # (H, H)
    b2 = (u(ks[6], (H,)) + u(ks[7], (H,))).reshape(1, H)
    wout = u(ks[8], (1, H)).T                               # (H, 1)
    bout = u(ks[9], (1,)).reshape(1, 1)
    return dict(wih1=wih1, whh1=whh1, b1=b1,
                wih2=wih2, whh2=whh2, b2=b2,
                wout=wout, bout=bout)


if __name__ == "__main__":
    B, T, INPUT, HIDDEN = 4, 8, 4, 32                       # small shapes for the module
    key = jax.random.PRNGKey(0)
    kx, kp = jax.random.split(key)
    x = jax.random.normal(kx, (B, T, INPUT), jnp.float32)
    params = init_params(kp, INPUT, HIDDEN)
    padded = prepare_params(params, INPUT)                  # one-time padding

    out = jax.block_until_ready(rnn_forward(x, padded))
    ref = jax.block_until_ready(ref_forward(x, params))

    assert out.shape == (B, 1), out.shape
    assert jnp.allclose(out, ref, atol=1e-5, rtol=1e-5), (out, ref)
    print("KERNEL_OK")
</pallas_src>

<mosaic_0001>
module attributes {stable_mosaic.version = 11 : i64} {
  func.func @rnn_forward_kernel(%arg0: memref<64x128xf32, #tpu.memory_space<vmem>>, %arg1: memref<128x128xf32, #tpu.memory_space<vmem>>, %arg2: memref<128x128xf32, #tpu.memory_space<vmem>>, %arg3: memref<1x128xf32, #tpu.memory_space<vmem>>, %arg4: memref<128x128xf32, #tpu.memory_space<vmem>>, %arg5: memref<128x128xf32, #tpu.memory_space<vmem>>, %arg6: memref<1x128xf32, #tpu.memory_space<vmem>>, %arg7: memref<128x128xf32, #tpu.memory_space<vmem>>, %arg8: memref<1x128xf32, #tpu.memory_space<vmem>>, %arg9: memref<8x128xf32, #tpu.memory_space<vmem>>, %arg10: memref<8x128xf32, #tpu.memory_space<vmem>>) attributes {dimension_semantics = [], scalar_prefetch = 0 : i64, scratch_operands = 1 : i64, tpu.core_type = #tpu.core_type<tc>} {
    %c0 = arith.constant 0 : index
    %c0_0 = arith.constant 0 : index
    %0 = vector.load %arg0[%c0, %c0_0] : memref<64x128xf32, #tpu.memory_space<vmem>>, vector<64x128xf32>
    %c0_1 = arith.constant 0 : index
    %c0_2 = arith.constant 0 : index
    %1 = vector.load %arg1[%c0_1, %c0_2] : memref<128x128xf32, #tpu.memory_space<vmem>>, vector<128x128xf32>
    %cst = arith.constant dense<0.000000e+00> : vector<64x128xf32>
    %2 = tpu.matmul %0, %1, %cst {dimension_numbers = #tpu.dot_dimension_numbers<[1], [0], [0], [1], [0, 0, 1, 1], [], []>} : vector<64x128xf32>, vector<128x128xf32>, vector<64x128xf32> -> vector<64x128xf32>
    %c0_3 = arith.constant 0 : index
    %c0_4 = arith.constant 0 : index
    %3 = vector.load %arg3[%c0_3, %c0_4] : memref<1x128xf32, #tpu.memory_space<vmem>>, vector<1x128xf32>
    %4 = vector.broadcast %3 : vector<1x128xf32> to vector<64x128xf32>
    %5 = arith.addf %2, %4 : vector<64x128xf32>
    %c0_5 = arith.constant 0 : index
    %c0_6 = arith.constant 0 : index
    %6 = vector.load %arg2[%c0_5, %c0_6] : memref<128x128xf32, #tpu.memory_space<vmem>>, vector<128x128xf32>
    %cst_7 = arith.constant 0.000000e+00 : f32
    %7 = vector.broadcast %cst_7 : f32 to vector<8x128xf32>
    %cst_8 = arith.constant 0.000000e+00 : f32
    %8 = vector.broadcast %cst_8 : f32 to vector<8x128xf32>
    %9 = vector.extract_strided_slice %5 {offsets = [0, 0], sizes = [8, 128], strides = [1, 1]} : vector<64x128xf32> to vector<8x128xf32>
    %cst_9 = arith.constant dense<0.000000e+00> : vector<8x128xf32>
    %10 = tpu.matmul %7, %6, %cst_9 {dimension_numbers = #tpu.dot_dimension_numbers<[1], [0], [0], [1], [0, 0, 1, 1], [], []>} : vector<8x128xf32>, vector<128x128xf32>, vector<8x128xf32> -> vector<8x128xf32>
    %11 = arith.addf %9, %10 : vector<8x128xf32>
    %12 = math.tanh %11 : vector<8x128xf32>
    %13 = arith.addf %8, %12 : vector<8x128xf32>
    %14 = vector.extract_strided_slice %5 {offsets = [8, 0], sizes = [8, 128], strides = [1, 1]} : vector<64x128xf32> to vector<8x128xf32>
    %cst_10 = arith.constant dense<0.000000e+00> : vector<8x128xf32>
    %15 = tpu.matmul %12, %6, %cst_10 {dimension_numbers = #tpu.dot_dimension_numbers<[1], [0], [0], [1], [0, 0, 1, 1], [], []>} : vector<8x128xf32>, vector<128x128xf32>, vector<8x128xf32> -> vector<8x128xf32>
    %16 = arith.addf %14, %15 : vector<8x128xf32>
    %17 = math.tanh %16 : vector<8x128xf32>
    %18 = arith.addf %13, %17 : vector<8x128xf32>
    %19 = vector.extract_strided_slice %5 {offsets = [16, 0], sizes = [8, 128], strides = [1, 1]} : vector<64x128xf32> to vector<8x128xf32>
    %cst_11 = arith.constant dense<0.000000e+00> : vector<8x128xf32>
    %20 = tpu.matmul %17, %6, %cst_11 {dimension_numbers = #tpu.dot_dimension_numbers<[1], [0], [0], [1], [0, 0, 1, 1], [], []>} : vector<8x128xf32>, vector<128x128xf32>, vector<8x128xf32> -> vector<8x128xf32>
    %21 = arith.addf %19, %20 : vector<8x128xf32>
    %22 = math.tanh %21 : vector<8x128xf32>
    %23 = arith.addf %18, %22 : vector<8x128xf32>
    %24 = vector.extract_strided_slice %5 {offsets = [24, 0], sizes = [8, 128], strides = [1, 1]} : vector<64x128xf32> to vector<8x128xf32>
    %cst_12 = arith.constant dense<0.000000e+00> : vector<8x128xf32>
    %25 = tpu.matmul %22, %6, %cst_12 {dimension_numbers = #tpu.dot_dimension_numbers<[1], [0], [0], [1], [0, 0, 1, 1], [], []>} : vector<8x128xf32>, vector<128x128xf32>, vector<8x128xf32> -> vector<8x128xf32>
    %26 = arith.addf %24, %25 : vector<8x128xf32>
    %27 = math.tanh %26 : vector<8x128xf32>
    %28 = arith.addf %23, %27 : vector<8x128xf32>
    %29 = vector.extract_strided_slice %5 {offsets = [32, 0], sizes = [8, 128], strides = [1, 1]} : vector<64x128xf32> to vector<8x128xf32>
    %cst_13 = arith.constant dense<0.000000e+00> : vector<8x128xf32>
    %30 = tpu.matmul %27, %6, %cst_13 {dimension_numbers = #tpu.dot_dimension_numbers<[1], [0], [0], [1], [0, 0, 1, 1], [], []>} : vector<8x128xf32>, vector<128x128xf32>, vector<8x128xf32> -> vector<8x128xf32>
    %31 = arith.addf %29, %30 : vector<8x128xf32>
    %32 = math.tanh %31 : vector<8x128xf32>
    %33 = arith.addf %28, %32 : vector<8x128xf32>
    %34 = vector.extract_strided_slice %5 {offsets = [40, 0], sizes = [8, 128], strides = [1, 1]} : vector<64x128xf32> to vector<8x128xf32>
    %cst_14 = arith.constant dense<0.000000e+00> : vector<8x128xf32>
    %35 = tpu.matmul %32, %6, %cst_14 {dimension_numbers = #tpu.dot_dimension_numbers<[1], [0], [0], [1], [0, 0, 1, 1], [], []>} : vector<8x128xf32>, vector<128x128xf32>, vector<8x128xf32> -> vector<8x128xf32>
    %36 = arith.addf %34, %35 : vector<8x128xf32>
    %37 = math.tanh %36 : vector<8x128xf32>
    %38 = arith.addf %33, %37 : vector<8x128xf32>
    %39 = vector.extract_strided_slice %5 {offsets = [48, 0], sizes = [8, 128], strides = [1, 1]} : vector<64x128xf32> to vector<8x128xf32>
    %cst_15 = arith.constant dense<0.000000e+00> : vector<8x128xf32>
    %40 = tpu.matmul %37, %6, %cst_15 {dimension_numbers = #tpu.dot_dimension_numbers<[1], [0], [0], [1], [0, 0, 1, 1], [], []>} : vector<8x128xf32>, vector<128x128xf32>, vector<8x128xf32> -> vector<8x128xf32>
    %41 = arith.addf %39, %40 : vector<8x128xf32>
    %42 = math.tanh %41 : vector<8x128xf32>
    %43 = arith.addf %38, %42 : vector<8x128xf32>
    %44 = vector.extract_strided_slice %5 {offsets = [56, 0], sizes = [8, 128], strides = [1, 1]} : vector<64x128xf32> to vector<8x128xf32>
    %cst_16 = arith.constant dense<0.000000e+00> : vector<8x128xf32>
    %45 = tpu.matmul %42, %6, %cst_16 {dimension_numbers = #tpu.dot_dimension_numbers<[1], [0], [0], [1], [0, 0, 1, 1], [], []>} : vector<8x128xf32>, vector<128x128xf32>, vector<8x128xf32> -> vector<8x128xf32>
    %46 = arith.addf %44, %45 : vector<8x128xf32>
    %47 = math.tanh %46 : vector<8x128xf32>
    %48 = arith.addf %43, %47 : vector<8x128xf32>
    %cst_17 = arith.constant 1.250000e-01 : f32
    %49 = vector.broadcast %cst_17 : f32 to vector<8x128xf32>
    %50 = arith.mulf %48, %49 : vector<8x128xf32>
    %c0_18 = arith.constant 0 : index
    %c0_19 = arith.constant 0 : index
    %51 = vector.load %arg4[%c0_18, %c0_19] : memref<128x128xf32, #tpu.memory_space<vmem>>, vector<128x128xf32>
    %cst_20 = arith.constant dense<0.000000e+00> : vector<8x128xf32>
    %52 = tpu.matmul %50, %51, %cst_20 {dimension_numbers = #tpu.dot_dimension_numbers<[1], [0], [0], [1], [0, 0, 1, 1], [], []>} : vector<8x128xf32>, vector<128x128xf32>, vector<8x128xf32> -> vector<8x128xf32>
    %c0_21 = arith.constant 0 : index
    %c0_22 = arith.constant 0 : index
    %53 = vector.load %arg6[%c0_21, %c0_22] : memref<1x128xf32, #tpu.memory_space<vmem>>, vector<1x128xf32>
    %54 = vector.broadcast %53 : vector<1x128xf32> to vector<8x128xf32>
    %55 = arith.addf %52, %54 : vector<8x128xf32>
    %c0_23 = arith.constant 0 : index
    %c0_24 = arith.constant 0 : index
    %56 = vector.load %arg5[%c0_23, %c0_24] : memref<128x128xf32, #tpu.memory_space<vmem>>, vector<128x128xf32>
    %cst_25 = arith.constant 0.000000e+00 : f32
    %57 = vector.broadcast %cst_25 : f32 to vector<8x128xf32>
    %c0_26 = arith.constant 0 : index
    %c0_27 = arith.constant 0 : index
    %58 = vector.load %arg10[%c0_26, %c0_27] : memref<8x128xf32, #tpu.memory_space<vmem>>, vector<8x128xf32>
    tpu.vector_store %arg10[%c0_26, %c0_27], %57 {strides = array<i32>} : memref<8x128xf32, #tpu.memory_space<vmem>>, vector<8x128xf32>,
    %cst_28 = arith.constant 0.000000e+00 : f32
    %59 = vector.broadcast %cst_28 : f32 to vector<1x128xf32>
    %60 = vector.extract_strided_slice %55 {offsets = [0, 0], sizes = [1, 128], strides = [1, 1]} : vector<8x128xf32> to vector<1x128xf32>
    %cst_29 = arith.constant dense<0.000000e+00> : vector<1x128xf32>
    %61 = tpu.matmul %59, %56, %cst_29 {dimension_numbers = #tpu.dot_dimension_numbers<[1], [0], [0], [1], [0, 0, 1, 1], [], []>} : vector<1x128xf32>, vector<128x128xf32>, vector<1x128xf32> -> vector<1x128xf32>
    %62 = arith.addf %60, %61 : vector<1x128xf32>
    %63 = math.tanh %62 : vector<1x128xf32>
    %c0_30 = arith.constant 0 : index
    %c0_31 = arith.constant 0 : index
    %64 = vector.load %arg10[%c0_30, %c0_31] : memref<8x128xf32, #tpu.memory_space<vmem>>, vector<1x128xf32>
    tpu.vector_store %arg10[%c0_30, %c0_31], %63 {strides = array<i32>} : memref<8x128xf32, #tpu.memory_space<vmem>>, vector<1x128xf32>,
    %65 = vector.extract_strided_slice %55 {offsets = [1, 0], sizes = [1, 128], strides = [1, 1]} : vector<8x128xf32> to vector<1x128xf32>
    %cst_32 = arith.constant dense<0.000000e+00> : vector<1x128xf32>
    %66 = tpu.matmul %63, %56, %cst_32 {dimension_numbers = #tpu.dot_dimension_numbers<[1], [0], [0], [1], [0, 0, 1, 1], [], []>} : vector<1x128xf32>, vector<128x128xf32>, vector<1x128xf32> -> vector<1x128xf32>
    %67 = arith.addf %65, %66 : vector<1x128xf32>
    %68 = math.tanh %67 : vector<1x128xf32>
    %c1 = arith.constant 1 : index
    %c0_33 = arith.constant 0 : index
    %69 = vector.load %arg10[%c1, %c0_33] : memref<8x128xf32, #tpu.memory_space<vmem>>, vector<1x128xf32>
    tpu.vector_store %arg10[%c1, %c0_33], %68 {strides = array<i32>} : memref<8x128xf32, #tpu.memory_space<vmem>>, vector<1x128xf32>,
    %70 = vector.extract_strided_slice %55 {offsets = [2, 0], sizes = [1, 128], strides = [1, 1]} : vector<8x128xf32> to vector<1x128xf32>
    %cst_34 = arith.constant dense<0.000000e+00> : vector<1x128xf32>
    %71 = tpu.matmul %68, %56, %cst_34 {dimension_numbers = #tpu.dot_dimension_numbers<[1], [0], [0], [1], [0, 0, 1, 1], [], []>} : vector<1x128xf32>, vector<128x128xf32>, vector<1x128xf32> -> vector<1x128xf32>
    %72 = arith.addf %70, %71 : vector<1x128xf32>
    %73 = math.tanh %72 : vector<1x128xf32>
    %c2 = arith.constant 2 : index
    %c0_35 = arith.constant 0 : index
    %74 = vector.load %arg10[%c2, %c0_35] : memref<8x128xf32, #tpu.memory_space<vmem>>, vector<1x128xf32>
    tpu.vector_store %arg10[%c2, %c0_35], %73 {strides = array<i32>} : memref<8x128xf32, #tpu.memory_space<vmem>>, vector<1x128xf32>,
    %75 = vector.extract_strided_slice %55 {offsets = [3, 0], sizes = [1, 128], strides = [1, 1]} : vector<8x128xf32> to vector<1x128xf32>
    %cst_36 = arith.constant dense<0.000000e+00> : vector<1x128xf32>
    %76 = tpu.matmul %73, %56, %cst_36 {dimension_numbers = #tpu.dot_dimension_numbers<[1], [0], [0], [1], [0, 0, 1, 1], [], []>} : vector<1x128xf32>, vector<128x128xf32>, vector<1x128xf32> -> vector<1x128xf32>
    %77 = arith.addf %75, %76 : vector<1x128xf32>
    %78 = math.tanh %77 : vector<1x128xf32>
    %c3 = arith.constant 3 : index
    %c0_37 = arith.constant 0 : index
    %79 = vector.load %arg10[%c3, %c0_37] : memref<8x128xf32, #tpu.memory_space<vmem>>, vector<1x128xf32>
    tpu.vector_store %arg10[%c3, %c0_37], %78 {strides = array<i32>} : memref<8x128xf32, #tpu.memory_space<vmem>>, vector<1x128xf32>,
    %c0_38 = arith.constant 0 : index
    %c0_39 = arith.constant 0 : index
    %80 = vector.load %arg10[%c0_38, %c0_39] : memref<8x128xf32, #tpu.memory_space<vmem>>, vector<8x128xf32>
    %c0_40 = arith.constant 0 : index
    %c0_41 = arith.constant 0 : index
    %81 = vector.load %arg7[%c0_40, %c0_41] : memref<128x128xf32, #tpu.memory_space<vmem>>, vector<128x128xf32>
    %cst_42 = arith.constant dense<0.000000e+00> : vector<8x128xf32>
    %82 = tpu.matmul %80, %81, %cst_42 {dimension_numbers = #tpu.dot_dimension_numbers<[1], [0], [0], [1], [0, 0, 1, 1], [], []>} : vector<8x128xf32>, vector<128x128xf32>, vector<8x128xf32> -> vector<8x128xf32>
    %c0_43 = arith.constant 0 : index
    %c0_44 = arith.constant 0 : index
    %83 = vector.load %arg8[%c0_43, %c0_44] : memref<1x128xf32, #tpu.memory_space<vmem>>, vector<1x128xf32>
    %84 = vector.broadcast %83 : vector<1x128xf32> to vector<8x128xf32>
    %85 = arith.addf %82, %84 : vector<8x128xf32>
    %c0_45 = arith.constant 0 : index
    %c0_46 = arith.constant 0 : index
    %86 = vector.load %arg9[%c0_45, %c0_46] : memref<8x128xf32, #tpu.memory_space<vmem>>, vector<8x128xf32>
    tpu.vector_store %arg9[%c0_45, %c0_46], %85 {strides = array<i32>} : memref<8x128xf32, #tpu.memory_space<vmem>>, vector<8x128xf32>,
    return
  }
}

</mosaic_0001>

<bundles_post_ra>
// kernel: rnn_forward.1
= control target key start
LH: loop header
LB: loop body
LE: loop exit
PB: predicated region body
PF: predicated region fallthrough
CT: control target
= control target key end

     0   :  { %14 = vsyncpa [#allocation4], 0  ;;  %s3156_s0 = inlined_call_operand.vmem [shape: f32[64,128], index: 0, kind: input, shape index: {}]   ;;  %s3157_s1 = inlined_call_operand.vmem [shape: f32[128,128], index: 1, kind: input, shape index: {}]   ;;  %s3158_s2 = inlined_call_operand.hbm [shape: f32[128,128], index: 2, kind: input, shape index: {}]   ;;  %s3159_s3 = inlined_call_operand.vmem [shape: f32[1,128], index: 3, kind: input, shape index: {}]   ;;  %s3160_s4 = inlined_call_operand.hbm [shape: f32[128,128], index: 4, kind: input, shape index: {}]   ;;  %s3161_s5 = inlined_call_operand.hbm [shape: f32[128,128], index: 5, kind: input, shape index: {}]   ;;  %s3162_s6 = inlined_call_operand.vmem [shape: f32[1,128], index: 6, kind: input, shape index: {}]   ;;  %s3163_s7 = inlined_call_operand.hbm [shape: f32[128,128], index: 7, kind: input, shape index: {}]   ;;  %s3164_s8 = inlined_call_operand.vmem [shape: f32[1,128], index: 8, kind: input, shape index: {}]   ;;  %s3165_s9 = inlined_call_operand.vmem [shape: f32[8,128], index: 9, kind: output, shape index: {}]  }
   0x1   :  { %15 = vsyncpa [#allocation6], 0 }
   0x2   :  { %16 = vsyncpa [#allocation9], 0  ;;  %s2637_s30 = smov [#allocation5]   ;;  %s2638_s11 = smov [#allocation3]  }
   0x3   :  { %s40_s10 = sshll.u32 %s2637_s30, 4  ;;  %s26_s12 = sshll.u32 %s2638_s11, 4  ;;  %s41_s10 = int_to_ptr.vmem [resolvable:$true] %s40_s10  ;;  %s2696_s12 = int_to_ptr.vmem [resolvable:$true] %s26_s12 }
   0x4   :  { %s2543_s15 = scalar_lea.hbm %s3160_s4, 2048 }
   0x5   :  { %p2544_p0 = scmp.ne.s32.totalorder %s3160_s4, %s2543_s15  ;;  %p2547_p1 = scmp.lt.u32.totalorder %s2543_s15, %s3160_s4 }
   0x7   :  { %p2549_p2 = pnand %p2547_p1, %p2544_p0 }
   0x9   :  { %2552 = shalt.err (!%p2549_p2)
}
   0xa   :  { %s2553_s20 = scalar_lea.vmem %s41_s10, 2048  ;;  %p2558_p4 = scmp.lt.s32.totalorder %s41_s10, %s41_s10 }
   0xb   :  { %p2554_p3 = scmp.ne.s32.totalorder %s41_s10, %s2553_s20  ;;  %p2559_p5 = scmp.lt.s32.totalorder %s2553_s20, %s2553_s20 }
   0xd   :  { %p2560_p6 = por %p2559_p5, %p2558_p4 }
   0xf   :  { %p2561_p7 = pnand %p2560_p6, %p2554_p3 }
  0x11   :  { %2564 = shalt.err (!%p2561_p7)
}
  0x12   :  { %s2639_s21 = smov 128   ;;  %s2640_s22 = smov 8  }
  0x13   :  { %46 = dma.hbm_to_vmem [thread:$0]  %s3160_s4, 2048, %s41_s10, [#allocation6], %s2639_s21, %s2639_s21, %s2640_s22  }
  0x14   :  { %s2565_s27 = scalar_lea.hbm %s3158_s2, 2048 }
  0x15   :  { %p2566_p8 = scmp.ne.s32.totalorder %s3158_s2, %s2565_s27  ;;  %p2569_p9 = scmp.lt.u32.totalorder %s2565_s27, %s3158_s2 }
  0x17   :  { %p2571_p10 = pnand %p2569_p9, %p2566_p8 }
  0x19   :  { %2574 = shalt.err (!%p2571_p10)
}
  0x1a   :  { %s2575_s13 = scalar_lea.vmem %s2696_s12, 2048  ;;  %p2580_p12 = scmp.lt.s32.totalorder %s2696_s12, %s2696_s12 }
  0x1b   :  { %p2576_p11 = scmp.ne.s32.totalorder %s2696_s12, %s2575_s13  ;;  %p2581_p13 = scmp.lt.s32.totalorder %s2575_s13, %s2575_s13 }
  0x1d   :  { %p2582_p0 = por %p2581_p13, %p2580_p12 }
  0x1f   :  { %p2583_p1 = pnand %p2582_p0, %p2576_p11 }
  0x21   :  { %2586 = shalt.err (!%p2583_p1)
}
  0x22   :  { %32 = dma.hbm_to_vmem [thread:$0]  %s3158_s2, 2048, %s2696_s12, [#allocation4], %s2639_s21, %s2639_s21, %s2640_s22  }
  0x23   :  { %s2641_s14 = smov [#allocation7]   ;;  %s2642_s16 = smov [#allocation8]  }
  0x24   :  { %s52_s15 = sshll.u32 %s2641_s14, 4  ;;  %s66_s17 = sshll.u32 %s2642_s16, 4  ;;  %s53_s15 = int_to_ptr.vmem [resolvable:$true] %s52_s15  ;;  %s2733_s17 = int_to_ptr.vmem [resolvable:$true] %s66_s17 }
  0x25   :  { %s2587_s20 = scalar_lea.hbm %s3161_s5, 2048 }
  0x26   :  { %p2588_p2 = scmp.ne.s32.totalorder %s3161_s5, %s2587_s20  ;;  %p2591_p3 = scmp.lt.u32.totalorder %s2587_s20, %s3161_s5 }
  0x28   :  { %p2593_p4 = pnand %p2591_p3, %p2588_p2 }
  0x2a   :  { %2596 = shalt.err (!%p2593_p4)
}
  0x2b   :  { %s2597_s2 = scalar_lea.vmem %s53_s15, 2048  ;;  %p2602_p6 = scmp.lt.s32.totalorder %s53_s15, %s53_s15 }
  0x2c   :  { %p2598_p5 = scmp.ne.s32.totalorder %s53_s15, %s2597_s2  ;;  %p2603_p7 = scmp.lt.s32.totalorder %s2597_s2, %s2597_s2 }
  0x2e   :  { %p2604_p8 = por %p2603_p7, %p2602_p6 }
  0x30   :  { %p2605_p9 = pnand %p2604_p8, %p2598_p5 }
  0x32   :  { %2608 = shalt.err (!%p2605_p9)
}
  0x33   :  { %58 = dma.hbm_to_vmem [thread:$0]  %s3161_s5, 2048, %s53_s15, [#allocation6], %s2639_s21, %s2639_s21, %s2640_s22  }
  0x34   :  { %s2609_s30 = scalar_lea.hbm %s3163_s7, 2048 }
  0x35   :  { %p2610_p10 = scmp.ne.s32.totalorder %s3163_s7, %s2609_s30  ;;  %p2613_p11 = scmp.lt.u32.totalorder %s2609_s30, %s3163_s7 }
  0x37   :  { %p2615_p12 = pnand %p2613_p11, %p2610_p10 }
  0x39   :  { %2618 = shalt.err (!%p2615_p12)
}
  0x3a   :  { %s2619_s14 = scalar_lea.vmem %s2733_s17, 2048  ;;  %p2624_p0 = scmp.lt.s32.totalorder %s2733_s17, %s2733_s17 }
  0x3b   :  { %p2620_p13 = scmp.ne.s32.totalorder %s2733_s17, %s2619_s14  ;;  %p2625_p1 = scmp.lt.s32.totalorder %s2619_s14, %s2619_s14 }
  0x3d   :  { %p2626_p2 = por %p2625_p1, %p2624_p0 }
  0x3f   :  { %p2627_p3 = pnand %p2626_p2, %p2620_p13 }
  0x41   :  { %2630 = shalt.err (!%p2627_p3)
}
  0x42   :  { %72 = dma.hbm_to_vmem [thread:$0]  %s3163_s7, 2048, %s2733_s17, [#allocation9], %s2639_s21, %s2639_s21, %s2640_s22  }
  0x43   :  { %2631 = dma.done.wait [#allocation4], 2048  }
  0x44   :  { %2632 = vsyncadd [#allocation4], 4294965248 }
  0x45   :  { %2633 = dma.done.wait [#allocation6], 4096  }
  0x46   :  { %2634 = vsyncadd [#allocation6], 4294963200 }
  0x47   :  { %2635 = dma.done.wait [#allocation9], 2048  }
  0x48   :  { %2636 = vsyncadd [#allocation9], 4294965248  ;;  %v2643_v0 = vmov 0.0|0.0   ;;  %vm2644_vm0 = vmmov 0   ;;  %v2645_v1 = vmov 0.0   ;;  %v95_v2 = vld [vmem:[%s3157_s1] sm:$0xff] }
  0x49   :  { %2174 = vmatprep.subr.bf16.mxu1 %v2643_v0  ;;  %1684 = vmatprep.mubr.msk.f32.mxu1 %vm2644_vm0, %v2645_v1  ;;  %933 = vst [vmem:[#allocation2] sm:$0xff] %v2645_v1  ;;  %v96_v3 = vld [vmem:[%s3157_s1 + $0x8] sm:$0xff]  ;;  %v224_v6 = vld [vmem:[#allocation3 + $0x8] sm:$0xff]  ;;  %v98_v8 = vld [vmem:[%s3157_s1 + $0x18] sm:$0xff] }
  0x4a   :  { %v223_v4 = vld [vmem:[#allocation3] sm:$0xff]  ;;  %v2142_v5 = vpack.c.bf16 %v96_v3, %v95_v2  ;;  %v97_v7 = vld [vmem:[%s3157_s1 + $0x10] sm:$0xff]  ;;  %v225_v11 = vld [vmem:[#allocation3 + $0x10] sm:$0xff] }
  0x4b   :  { %v2786_v9 = vpack.c.bf16 %v224_v6, %v223_v4  ;;  %v2146_v10 = vpack.c.bf16 %v98_v8, %v97_v7  ;;  %v226_v12 = vld [vmem:[#allocation3 + $0x18] sm:$0xff]  ;;  %v100_v14 = vld [vmem:[%s3157_s1 + $0x28] sm:$0xff]  ;;  %v228_v18 = vld [vmem:[#allocation3 + $0x28] sm:$0xff] }
  0x4c   :  { %v99_v13 = vld [vmem:[%s3157_s1 + $0x20] sm:$0xff]  ;;  %2143 = vmatprep.subr.bf16.mxu0 %v2142_v5  ;;  %v2795_v15 = vpack.c.bf16 %v226_v12, %v225_v11  ;;  %v227_v17 = vld [vmem:[#allocation3 + $0x20] sm:$0xff]  ;;  %v101_v19 = vld [vmem:[%s3157_s1 + $0x30] sm:$0xff] }
  0x4d   :  { %2145 = vmatpush3.bf16.msra.mxu0 %v2142_v5  ;;  %2176 = vmatpush3.bf16.msra.mxu1 %v2786_v9  ;;  %v2150_v16 = vpack.c.bf16 %v100_v14, %v99_v13  ;;  %v102_v20 = vld [vmem:[%s3157_s1 + $0x38] sm:$0xff]  ;;  %v2805_v21 = vpack.c.bf16 %v228_v18, %v227_v17  ;;  %v230_v24 = vld [vmem:[#allocation3 + $0x38] sm:$0xff]  ;;  %v104_v26 = vld [vmem:[%s3157_s1 + $0x48] sm:$0xff] }
  0x4e   :  { %2147 = vmatprep.subr.bf16.mxu0 %v2146_v10  ;;  %2177 = vmatprep.subr.bf16.mxu1 %v2643_v0  ;;  %v2154_v22 = vpack.c.bf16 %v102_v20, %v101_v19  ;;  %v229_v23 = vld [vmem:[#allocation3 + $0x30] sm:$0xff]  ;;  %v103_v25 = vld [vmem:[%s3157_s1 + $0x40] sm:$0xff]  ;;  %v231_v30 = vld [vmem:[#allocation3 + $0x40] sm:$0xff] }
  0x4f   :  { %v87_v27 = vld [vmem:[%s3156_s0] sm:$0xff]  ;;  %v2818_v28 = vpack.c.bf16 %v230_v24, %v229_v23  ;;  %v2158_v29 = vpack.c.bf16 %v104_v26, %v103_v25  ;;  %v232_v31 = vld [vmem:[#allocation3 + $0x48] sm:$0xff]  ;;  %v106_v33 = vld [vmem:[%s3157_s1 + $0x58] sm:$0xff] }
  0x50   :  { %1640 = vmatprep.mubr.f32.mxu0 %v87_v27  ;;  %v105_v32 = vld [vmem:[%s3157_s1 + $0x50] sm:$0xff]  ;;  %v2828_v34 = vpack.c.bf16 %v232_v31, %v231_v30  ;;  %v233_v36 = vld [vmem:[#allocation3 + $0x50] sm:$0xff]  ;;  %v234_v37 = vld [vmem:[#allocation3 + $0x58] sm:$0xff] }
  0x51   :  { %2149 = vmatpush3.bf16.msra.mxu0 %v2146_v10  ;;  %2179 = vmatpush3.bf16.msra.mxu1 %v2795_v15  ;;  %v2162_v35 = vpack.c.bf16 %v106_v33, %v105_v32  ;;  %v107_v38 = vld [vmem:[%s3157_s1 + $0x60] sm:$0xff]  ;;  %v108_v39 = vld [vmem:[%s3157_s1 + $0x68] sm:$0xff]  ;;  %v2838_v40 = vpack.c.bf16 %v234_v37, %v233_v36  ;;  %v236_v43 = vld [vmem:[#allocation3 + $0x68] sm:$0xff] }
  0x52   :  { %2151 = vmatprep.subr.bf16.mxu0 %v2150_v16  ;;  %2180 = vmatprep.subr.bf16.mxu1 %v2643_v0  ;;  %v2166_v41 = vpack.c.bf16 %v108_v39, %v107_v38  ;;  %v235_v42 = vld [vmem:[#allocation3 + $0x60] sm:$0xff]  ;;  %v109_v44 = vld [vmem:[%s3157_s1 + $0x70] sm:$0xff]  ;;  %v110_v45 = vld [vmem:[%s3157_s1 + $0x78] sm:$0xff] }
  0x53   :  { %v2848_v46 = vpack.c.bf16 %v236_v43, %v235_v42  ;;  %v2170_v47 = vpack.c.bf16 %v110_v45, %v109_v44  ;;  %v237_v48 = vld [vmem:[#allocation3 + $0x70] sm:$0xff]  ;;  %v238_v49 = vld [vmem:[#allocation3 + $0x78] sm:$0xff]  ;;  %v88_v51 = vld [vmem:[%s3156_s0 + $0x8] sm:$0xff] }
  0x54   :  { %v2852_v50 = vpack.c.bf16 %v238_v49, %v237_v48  ;;  %v89_v52 = vld [vmem:[%s3156_s0 + $0x10] sm:$0xff]  ;;  %v90_v53 = vld [vmem:[%s3156_s0 + $0x18] sm:$0xff]  ;;  %v91_v54 = vld [vmem:[%s3156_s0 + $0x20] sm:$0xff] }
  0x55   :  { %2153 = vmatpush3.bf16.msra.mxu0 %v2150_v16  ;;  %2182 = vmatpush3.bf16.msra.mxu1 %v2805_v21  ;;  %v92_v55 = vld [vmem:[%s3156_s0 + $0x28] sm:$0xff]  ;;  %v93_v56 = vld [vmem:[%s3156_s0 + $0x30] sm:$0xff]  ;;  %v94_v57 = vld [vmem:[%s3156_s0 + $0x38] sm:$0xff] }
  0x56   :  { %2155 = vmatprep.subr.bf16.mxu0 %v2154_v22  ;;  %2183 = vmatprep.subr.bf16.mxu1 %v2643_v0  ;;  %v2919_v58 = vld [vmem:[%s3159_s3] ss:$0 sm:$0xff]  ;;  %v826_v43 = vld [vmem:[#allocation5 + $0x10] sm:$0xff] }
  0x57   :  { %v827_v44 = vld [vmem:[#allocation5 + $0x18] sm:$0xff]  ;;  %v830_v49 = vld [vmem:[#allocation5 + $0x30] sm:$0xff] }
  0x58   :  { %v2370_v45 = vpack.c.bf16 %v827_v44, %v826_v43 }
  0x59   :  { %2157 = vmatpush3.bf16.msra.mxu0 %v2154_v22  ;;  %2185 = vmatpush3.bf16.msra.mxu1 %v2818_v28 }
  0x5a   :  { %2159 = vmatprep.subr.bf16.mxu0 %v2158_v29  ;;  %2186 = vmatprep.subr.bf16.mxu1 %v2643_v0 }
  0x5d   :  { %2161 = vmatpush3.bf16.msra.mxu0 %v2158_v29  ;;  %2188 = vmatpush3.bf16.msra.mxu1 %v2828_v34 }
  0x5e   :  { %2163 = vmatprep.subr.bf16.mxu0 %v2162_v35  ;;  %2189 = vmatprep.subr.bf16.mxu1 %v2643_v0 }
  0x61   :  { %2165 = vmatpush3.bf16.msra.mxu0 %v2162_v35  ;;  %2191 = vmatpush3.bf16.msra.mxu1 %v2838_v40 }
  0x62   :  { %2167 = vmatprep.subr.bf16.mxu0 %v2166_v41  ;;  %2192 = vmatprep.subr.bf16.mxu1 %v2643_v0 }
  0x65   :  { %2169 = vmatpush3.bf16.msra.mxu0 %v2166_v41  ;;  %2194 = vmatpush3.bf16.msra.mxu1 %v2848_v46  ;;  %v825_v41 = vld [vmem:[#allocation5 + $0x8] sm:$0xff] }
  0x66   :  { %2171 = vmatprep.subr.bf16.mxu0 %v2170_v47  ;;  %2195 = vmatprep.subr.bf16.mxu1 %v2643_v0 }
  0x69   :  { %2173 = vmatpush3.bf16.msra.mxu0 %v2170_v47  ;;  %2197 = vmatpush3.bf16.msra.mxu1 %v2852_v50  ;;  %v829_v47 = vld [vmem:[#allocation5 + $0x28] sm:$0xff] }
  0x6a   :  { %2198 = vmatprep.subr.bf16.mxu0 %v2643_v0  ;;  %2222 = vmatprep.subr.bf16.mxu1 %v2643_v0 }
  0x6c   :  { %1641 = vmatmul.mubr.f32.vlgmr.msra.gmra.mrb[0].mxu0 %v88_v51  ;;  %1685 = vmatmul.mubr.f32.vlgmr.msra.gmra.mrb[0].mxu1 %v2645_v1 }
  0x6d   :  { %2200 = vmatpush3.bf16.msra.mxu0 %v2786_v9  ;;  %2224 = vmatpush3.bf16.msra.mxu1 %v2786_v9 }
  0x6e   :  { %2201 = vmatprep.subr.bf16.mxu0 %v2643_v0  ;;  %2225 = vmatprep.subr.bf16.mxu1 %v2643_v0 }
  0x6f   :  { %1754 = vmatprep.mubr.msk.f32.mxu1 %vm2644_vm0, %v2645_v1  ;;  %1643 = vmatprep.mubr.f32.mxu0 %v89_v52 }
  0x70   :  { %1644 = vmatmul.mubr.f32.gmra.mrb[2].mxu0 %v90_v53 }
  0x71   :  { %2203 = vmatpush3.bf16.msra.mxu0 %v2795_v15  ;;  %2227 = vmatpush3.bf16.msra.mxu1 %v2795_v15 }
  0x72   :  { %2204 = vmatprep.subr.bf16.mxu0 %v2643_v0  ;;  %2228 = vmatprep.subr.bf16.mxu1 %v2643_v0 }
  0x73   :  { %1646 = vmatprep.mubr.f32.mxu0 %v91_v54 }
  0x74   :  { %1647 = vmatmul.mubr.f32.gmra.mrb[4].mxu0 %v92_v55 }
  0x75   :  { %2206 = vmatpush3.bf16.msra.mxu0 %v2805_v21  ;;  %2230 = vmatpush3.bf16.msra.mxu1 %v2805_v21 }
  0x76   :  { %2207 = vmatprep.subr.bf16.mxu0 %v2643_v0  ;;  %2231 = vmatprep.subr.bf16.mxu1 %v2643_v0 }
  0x77   :  { %1649 = vmatprep.mubr.f32.mxu0 %v93_v56  ;;  %v917_v56 = vld [vmem:[#allocation7] sm:$0xff] }
  0x78   :  { %1650 = vmatmul.mubr.f32.gmra.mrb[6].mxu0 %v94_v57  ;;  %v918_v57 = vld [vmem:[#allocation7 + $0x8] sm:$0xff] }
  0x79   :  { %2209 = vmatpush3.bf16.msra.mxu0 %v2818_v28  ;;  %2233 = vmatpush3.bf16.msra.mxu1 %v2818_v28 }
  0x7a   :  { %2210 = vmatprep.subr.bf16.mxu0 %v2643_v0  ;;  %2234 = vmatprep.subr.bf16.mxu1 %v2643_v0 }
  0x7b   :  { %1719 = vmatprep.mubr.msk.f32.mxu0 %vm2644_vm0, %v2645_v1 }
  0x7d   :  { %2212 = vmatpush3.bf16.msra.mxu0 %v2828_v34  ;;  %2236 = vmatpush3.bf16.msra.mxu1 %v2828_v34 }
  0x7e   :  { %2213 = vmatprep.subr.bf16.mxu0 %v2643_v0  ;;  %2237 = vmatprep.subr.bf16.mxu1 %v2643_v0 }
  0x81   :  { %2215 = vmatpush3.bf16.msra.mxu0 %v2838_v40  ;;  %2239 = vmatpush3.bf16.msra.mxu1 %v2838_v40 }
  0x82   :  { %2216 = vmatprep.subr.bf16.mxu0 %v2643_v0  ;;  %2240 = vmatprep.subr.bf16.mxu1 %v2643_v0 }
  0x85   :  { %2218 = vmatpush3.bf16.msra.mxu0 %v2848_v46  ;;  %2242 = vmatpush3.bf16.msra.mxu1 %v2848_v46 }
  0x86   :  { %2219 = vmatprep.subr.bf16.mxu0 %v2643_v0  ;;  %2243 = vmatprep.subr.bf16.mxu1 %v2643_v0 }
  0x89   :  { %2221 = vmatpush3.bf16.msra.mxu0 %v2852_v50  ;;  %2245 = vmatpush3.bf16.msra.mxu1 %v2852_v50 }
  0x8a   :  { %2246 = vmatprep.subr.bf16.mxu0 %v2643_v0  ;;  %2270 = vmatprep.subr.bf16.mxu1 %v2643_v0 }
 0x13f   :  { %v1642_v59 = vpop.f32.mrb[0].mxu0  ;;  %v305_v60 = vpop.f32.mrb[0].mxu1 }
 0x140   :  { %v184_v61 = vpop.f32.mrb[1].mxu0  ;;  %v1686_v62 = vpop.f32.mrb[1].mxu1  ;;  %v190_v11 = vadd.f32 %v1642_v59, %v2919_v58  ;;  %v3035_v59 = vpack.c.bf16 %v918_v57, %v917_v56  ;;  %v1245_v57 = vld [vmem:[#allocation8 + $0x18] sm:$0xff] }
 0x141   :  { %v185_v63 = vadd.f32 %v2919_v58, %v184_v61  ;;  %v920_v61 = vld [vmem:[#allocation7 + $0x18] sm:$0xff] }
 0x143   :  { %v309_v2 = vadd.f32 %v305_v60, %v185_v63  ;;  %v1645_v4 = vpop.f32.mrb[2].mxu0  ;;  %v919_v60 = vld [vmem:[#allocation7 + $0x10] sm:$0xff] }
 0x144   :  { %v194_v5 = vpop.f32.mrb[3].mxu0  ;;  %v200_v25 = vadd.f32 %v1645_v4, %v2919_v58  ;;  %v922_v4 = vld [vmem:[#allocation7 + $0x28] sm:$0xff] }
 0x145   :  { %2519 = vtanh.f32 %v309_v2  ;;  %v195_v17 = vadd.f32 %v2919_v58, %v194_v5  ;;  %v3040_v2 = vpack.c.bf16 %v920_v61, %v919_v60 }
 0x147   :  { %v2940_v6 = vpop.f32.mrb[4].mxu0 }
 0x148   :  { %v2942_v7 = vpop.f32.mrb[5].mxu0 }
 0x149   :  { %v205_v32 = vadd.f32 %v2919_v58, %v2942_v7  ;;  %v924_v7 = vld [vmem:[#allocation7 + $0x38] sm:$0xff] }
 0x14b   :  { %v2944_v8 = vpop.f32.mrb[6].mxu0 }
 0x14c   :  { %v2946_v10 = vpop.f32.mrb[7].mxu0 }
 0x14d   :  { %v215_v52 = vadd.f32 %v2919_v58, %v2946_v10 }
 0x14f   :  { %v2520_v3 = vpop.eup %2519 }
 0x150   :  { %1720 = vmatmul.mubr.f32.vlgmr.msra.gmra.mrb[8].mxu0 %v2520_v3 }
 0x151   :  { %2248 = vmatpush3.bf16.msra.mxu0 %v2786_v9  ;;  %1789 = vmatprep.mubr.msk.f32.mxu0 %vm2644_vm0, %v2645_v1 }
 0x152   :  { %2249 = vmatprep.subr.bf16.mxu0 %v2643_v0 }
 0x155   :  { %2251 = vmatpush3.bf16.msra.mxu0 %v2795_v15 }
 0x156   :  { %2252 = vmatprep.subr.bf16.mxu0 %v2643_v0 }
 0x159   :  { %2254 = vmatpush3.bf16.msra.mxu0 %v2805_v21 }
 0x15a   :  { %2255 = vmatprep.subr.bf16.mxu0 %v2643_v0 }
 0x15d   :  { %2257 = vmatpush3.bf16.msra.mxu0 %v2818_v28 }
 0x15e   :  { %2258 = vmatprep.subr.bf16.mxu0 %v2643_v0 }
 0x161   :  { %2260 = vmatpush3.bf16.msra.mxu0 %v2828_v34 }
 0x162   :  { %2261 = vmatprep.subr.bf16.mxu0 %v2643_v0 }
 0x165   :  { %2263 = vmatpush3.bf16.msra.mxu0 %v2838_v40 }
 0x166   :  { %2264 = vmatprep.subr.bf16.mxu0 %v2643_v0 }
 0x169   :  { %2266 = vmatpush3.bf16.msra.mxu0 %v2848_v46 }
 0x16a   :  { %2267 = vmatprep.subr.bf16.mxu0 %v2643_v0 }
 0x16d   :  { %2269 = vmatpush3.bf16.msra.mxu0 %v2852_v50 }
 0x16e   :  { %2294 = vmatprep.subr.bf16.mxu0 %v2643_v0 }
 0x223   :  { %v378_v12 = vpop.f32.mrb[8].mxu0 }
 0x224   :  { %v382_v13 = vadd.f32 %v378_v12, %v190_v11  ;;  %v1721_v14 = vpop.f32.mrb[9].mxu0  ;;  %v832_v11 = vld [vmem:[#allocation5 + $0x40] sm:$0xff]  ;;  %v833_v12 = vld [vmem:[#allocation5 + $0x48] sm:$0xff] }
 0x225   :  { %v925_v14 = vld [vmem:[#allocation7 + $0x40] sm:$0xff] }
 0x226   :  { %2521 = vtanh.f32 %v382_v13  ;;  %v2379_v13 = vpack.c.bf16 %v833_v12, %v832_v11  ;;  %v1250_v11 = vld [vmem:[#allocation8 + $0x40] sm:$0xff]  ;;  %v1251_v12 = vld [vmem:[#allocation8 + $0x48] sm:$0xff] }
 0x230   :  { %v2522_v16 = vpop.eup %2521 }
 0x231   :  { %1755 = vmatmul.mubr.f32.vlgmr.msra.gmra.mrb[2].mxu1 %v2522_v16  ;;  %v384_v22 = vadd.f32 %v2522_v16, %v2520_v3  ;;  %v921_v3 = vld [vmem:[#allocation7 + $0x20] sm:$0xff]  ;;  %v926_v16 = vld [vmem:[#allocation7 + $0x48] sm:$0xff] }
 0x232   :  { %2272 = vmatpush3.bf16.msra.mxu1 %v2786_v9  ;;  %1824 = vmatprep.mubr.msk.f32.mxu1 %vm2644_vm0, %v2645_v1  ;;  %v3046_v5 = vpack.c.bf16 %v922_v4, %v921_v3  ;;  %v1246_v3 = vld [vmem:[#allocation8 + $0x20] sm:$0xff]  ;;  %v1247_v4 = vld [vmem:[#allocation8 + $0x28] sm:$0xff] }
 0x233   :  { %2273 = vmatprep.subr.bf16.mxu1 %v2643_v0 }
 0x236   :  { %2275 = vmatpush3.bf16.msra.mxu1 %v2795_v15 }
 0x237   :  { %2276 = vmatprep.subr.bf16.mxu1 %v2643_v0 }
 0x23a   :  { %2278 = vmatpush3.bf16.msra.mxu1 %v2805_v21 }
 0x23b   :  { %2279 = vmatprep.subr.bf16.mxu1 %v2643_v0 }
 0x23e   :  { %2281 = vmatpush3.bf16.msra.mxu1 %v2818_v28 }
 0x23f   :  { %2282 = vmatprep.subr.bf16.mxu1 %v2643_v0 }
 0x242   :  { %2284 = vmatpush3.bf16.msra.mxu1 %v2828_v34 }
 0x243   :  { %2285 = vmatprep.subr.bf16.mxu1 %v2643_v0 }
 0x246   :  { %2287 = vmatpush3.bf16.msra.mxu1 %v2838_v40 }
 0x247   :  { %2288 = vmatprep.subr.bf16.mxu1 %v2643_v0 }
 0x24a   :  { %2290 = vmatpush3.bf16.msra.mxu1 %v2848_v46 }
 0x24b   :  { %2291 = vmatprep.subr.bf16.mxu1 %v2643_v0 }
 0x24e   :  { %2293 = vmatpush3.bf16.msra.mxu1 %v2852_v50 }
 0x24f   :  { %2318 = vmatprep.subr.bf16.mxu1 %v2643_v0 }
 0x304   :  { %v451_v18 = vpop.f32.mrb[2].mxu1 }
 0x305   :  { %v455_v19 = vadd.f32 %v451_v18, %v195_v17  ;;  %v1756_v20 = vpop.f32.mrb[3].mxu1  ;;  %v3055_v17 = vpack.c.bf16 %v926_v16, %v925_v14  ;;  %v834_v18 = vld [vmem:[#allocation5 + $0x50] sm:$0xff]  ;;  %v1253_v16 = vld [vmem:[#allocation8 + $0x58] sm:$0xff] }
 0x306   :  { %v927_v20 = vld [vmem:[#allocation7 + $0x50] sm:$0xff] }
 0x307   :  { %2523 = vtanh.f32 %v455_v19  ;;  %v835_v19 = vld [vmem:[#allocation5 + $0x58] sm:$0xff]  ;;  %v1252_v14 = vld [vmem:[#allocation8 + $0x50] sm:$0xff] }
 0x311   :  { %v2524_v23 = vpop.eup %2523 }
 0x312   :  { %v457_v24 = vadd.f32 %v2524_v23, %v384_v22  ;;  %1790 = vmatmul.mubr.f32.vlgmr.msra.gmra.mrb[10].mxu0 %v2524_v23  ;;  %v2382_v22 = vpack.c.bf16 %v835_v19, %v834_v18  ;;  %v928_v23 = vld [vmem:[#allocation7 + $0x58] sm:$0xff]  ;;  %v1254_v18 = vld [vmem:[#allocation8 + $0x60] sm:$0xff]  ;;  %v1255_v19 = vld [vmem:[#allocation8 + $0x68] sm:$0xff] }
 0x313   :  { %2296 = vmatpush3.bf16.msra.mxu0 %v2786_v9  ;;  %1859 = vmatprep.mubr.msk.f32.mxu0 %vm2644_vm0, %v2645_v1 }
 0x314   :  { %2297 = vmatprep.subr.bf16.mxu0 %v2643_v0 }
 0x317   :  { %2299 = vmatpush3.bf16.msra.mxu0 %v2795_v15 }
 0x318   :  { %2300 = vmatprep.subr.bf16.mxu0 %v2643_v0 }
 0x31b   :  { %2302 = vmatpush3.bf16.msra.mxu0 %v2805_v21 }
 0x31c   :  { %2303 = vmatprep.subr.bf16.mxu0 %v2643_v0 }
 0x31f   :  { %2305 = vmatpush3.bf16.msra.mxu0 %v2818_v28 }
 0x320   :  { %2306 = vmatprep.subr.bf16.mxu0 %v2643_v0 }
 0x323   :  { %2308 = vmatpush3.bf16.msra.mxu0 %v2828_v34 }
 0x324   :  { %2309 = vmatprep.subr.bf16.mxu0 %v2643_v0 }
 0x327   :  { %2311 = vmatpush3.bf16.msra.mxu0 %v2838_v40 }
 0x328   :  { %2312 = vmatprep.subr.bf16.mxu0 %v2643_v0 }
 0x32b   :  { %2314 = vmatpush3.bf16.msra.mxu0 %v2848_v46 }
 0x32c   :  { %2315 = vmatprep.subr.bf16.mxu0 %v2643_v0 }
 0x32f   :  { %2317 = vmatpush3.bf16.msra.mxu0 %v2852_v50 }
 0x330   :  { %2342 = vmatprep.subr.bf16.mxu0 %v2643_v0 }
 0x3e5   :  { %v524_v26 = vpop.f32.mrb[10].mxu0 }
 0x3e6   :  { %v528_v27 = vadd.f32 %v524_v26, %v200_v25  ;;  %v1791_v29 = vpop.f32.mrb[11].mxu0  ;;  %v837_v25 = vld [vmem:[#allocation5 + $0x68] sm:$0xff]  ;;  %v3060_v26 = vpack.c.bf16 %v928_v23, %v927_v20  ;;  %v2505_v20 = vpack.c.bf16 %v1255_v19, %v1254_v18  ;;  %v1257_v23 = vld [vmem:[#allocation8 + $0x78] sm:$0xff] }
 0x3e7   :  { %v930_v29 = vld [vmem:[#allocation7 + $0x68] sm:$0xff] }
 0x3e8   :  { %2525 = vtanh.f32 %v528_v27  ;;  %v929_v27 = vld [vmem:[#allocation7 + $0x60] sm:$0xff] }
 0x3f2   :  { %v2526_v30 = vpop.eup %2525 }
 0x3f3   :  { %v530_v31 = vadd.f32 %v2526_v30, %v457_v24  ;;  %1825 = vmatmul.mubr.f32.vlgmr.msra.gmra.mrb[4].mxu1 %v2526_v30  ;;  %v836_v24 = vld [vmem:[#allocation5 + $0x60] sm:$0xff] }
 0x3f4   :  { %2320 = vmatpush3.bf16.msra.mxu1 %v2786_v9  ;;  %1894 = vmatprep.mubr.msk.f32.mxu1 %vm2644_vm0, %v2645_v1  ;;  %v2385_v30 = vpack.c.bf16 %v837_v25, %v836_v24 }
 0x3f5   :  { %2321 = vmatprep.subr.bf16.mxu1 %v2643_v0 }
 0x3f8   :  { %2323 = vmatpush3.bf16.msra.mxu1 %v2795_v15 }
 0x3f9   :  { %2324 = vmatprep.subr.bf16.mxu1 %v2643_v0 }
 0x3fc   :  { %2326 = vmatpush3.bf16.msra.mxu1 %v2805_v21 }
 0x3fd   :  { %2327 = vmatprep.subr.bf16.mxu1 %v2643_v0 }
 0x400   :  { %2329 = vmatpush3.bf16.msra.mxu1 %v2818_v28 }
 0x401   :  { %2330 = vmatprep.subr.bf16.mxu1 %v2643_v0 }
 0x404   :  { %2332 = vmatpush3.bf16.msra.mxu1 %v2828_v34 }
 0x405   :  { %2333 = vmatprep.subr.bf16.mxu1 %v2643_v0 }
 0x408   :  { %2335 = vmatpush3.bf16.msra.mxu1 %v2838_v40 }
 0x409   :  { %2336 = vmatprep.subr.bf16.mxu1 %v2643_v0 }
 0x40c   :  { %2338 = vmatpush3.bf16.msra.mxu1 %v2848_v46 }
 0x40d   :  { %2339 = vmatprep.subr.bf16.mxu1 %v2643_v0 }
 0x410   :  { %2341 = vmatpush3.bf16.msra.mxu1 %v2852_v50 }
 0x411   :  { %2366 = vmatprep.subr.bf16.mxu1 %v2643_v0 }
 0x4c6   :  { %v597_v33 = vpop.f32.mrb[4].mxu1 }
 0x4c7   :  { %v601_v35 = vadd.f32 %v597_v33, %v205_v32  ;;  %v1826_v36 = vpop.f32.mrb[5].mxu1  ;;  %v838_v32 = vld [vmem:[#allocation5 + $0x70] sm:$0xff]  ;;  %v839_v33 = vld [vmem:[#allocation5 + $0x78] sm:$0xff] }
 0x4c8   :  { %v932_v36 = vld [vmem:[#allocation7 + $0x78] sm:$0xff] }
 0x4c9   :  { %2527 = vtanh.f32 %v601_v35  ;;  %v931_v35 = vld [vmem:[#allocation7 + $0x70] sm:$0xff] }
 0x4d3   :  { %v2528_v37 = vpop.eup %2527 }
 0x4d4   :  { %v603_v38 = vadd.f32 %v2528_v37, %v530_v31  ;;  %1860 = vmatmul.mubr.f32.vlgmr.msra.gmra.mrb[12].mxu0 %v2528_v37  ;;  %v3064_v31 = vpack.c.bf16 %v930_v29, %v929_v27  ;;  %v2388_v37 = vpack.c.bf16 %v839_v33, %v838_v32  ;;  %v1345_v32 = vld [vmem:[%s3164_s8] ss:$0 sm:$0xff] }
 0x4d5   :  { %2344 = vmatpush3.bf16.msra.mxu0 %v2786_v9  ;;  %1929 = vmatprep.mubr.msk.f32.mxu0 %vm2644_vm0, %v2645_v1  ;;  %v210_v9 = vadd.f32 %v2940_v6, %v2919_v58  ;;  %v923_v6 = vld [vmem:[#allocation7 + $0x30] sm:$0xff] }
 0x4d6   :  { %2345 = vmatprep.subr.bf16.mxu0 %v2643_v0  ;;  %v3051_v10 = vpack.c.bf16 %v924_v7, %v923_v6  ;;  %v1248_v6 = vld [vmem:[#allocation8 + $0x30] sm:$0xff]  ;;  %v1249_v7 = vld [vmem:[#allocation8 + $0x38] sm:$0xff] }
 0x4d9   :  { %2347 = vmatpush3.bf16.msra.mxu0 %v2795_v15 }
 0x4da   :  { %2348 = vmatprep.subr.bf16.mxu0 %v2643_v0 }
 0x4dd   :  { %2350 = vmatpush3.bf16.msra.mxu0 %v2805_v21 }
 0x4de   :  { %2351 = vmatprep.subr.bf16.mxu0 %v2643_v0 }
 0x4e1   :  { %2353 = vmatpush3.bf16.msra.mxu0 %v2818_v28 }
 0x4e2   :  { %2354 = vmatprep.subr.bf16.mxu0 %v2643_v0 }
 0x4e5   :  { %2356 = vmatpush3.bf16.msra.mxu0 %v2828_v34 }
 0x4e6   :  { %2357 = vmatprep.subr.bf16.mxu0 %v2643_v0 }
 0x4e9   :  { %2359 = vmatpush3.bf16.msra.mxu0 %v2838_v40  ;;  %v824_v40 = vld [vmem:[#allocation5] sm:$0xff] }
 0x4ea   :  { %2360 = vmatprep.subr.bf16.mxu0 %v2643_v0  ;;  %v2367_v42 = vpack.c.bf16 %v825_v41, %v824_v40  ;;  %v1344_v41 = vld [vmem:[%s3162_s6] ss:$0 sm:$0xff] }
 0x4ed   :  { %2362 = vmatpush3.bf16.msra.mxu0 %v2848_v46  ;;  %v828_v46 = vld [vmem:[#allocation5 + $0x20] sm:$0xff] }
 0x4ee   :  { %2363 = vmatprep.subr.bf16.mxu0 %v2643_v0  ;;  %v2373_v48 = vpack.c.bf16 %v829_v47, %v828_v46 }
 0x4f1   :  { %2365 = vmatpush3.bf16.msra.mxu0 %v2852_v50  ;;  %v831_v50 = vld [vmem:[#allocation5 + $0x38] sm:$0xff] }
 0x4f2   :  { %2390 = vmatprep.subr.bf16.mxu0 %v2643_v0  ;;  %v2376_v51 = vpack.c.bf16 %v831_v50, %v830_v49 }
 0x5a7   :  { %v670_v15 = vpop.f32.mrb[12].mxu0 }
 0x5a8   :  { %v674_v21 = vadd.f32 %v670_v15, %v210_v9  ;;  %v1861_v28 = vpop.f32.mrb[13].mxu0  ;;  %v220_v9 = vadd.f32 %v2944_v8, %v2919_v58 }
 0x5aa   :  { %2529 = vtanh.f32 %v674_v21 }
 0x5b4   :  { %v2530_v34 = vpop.eup %2529 }
 0x5b5   :  { %1895 = vmatmul.mubr.f32.vlgmr.msra.gmra.mrb[6].mxu1 %v2530_v34  ;;  %v676_v39 = vadd.f32 %v2530_v34, %v603_v38  ;;  %v3069_v38 = vpack.c.bf16 %v932_v36, %v931_v35 }
 0x5b6   :  { %1964 = vmatprep.mubr.msk.f32.mxu1 %vm2644_vm0, %v2645_v1  ;;  %2368 = vmatpush3.bf16.msra.mxu1 %v2367_v42 }
 0x5b7   :  { %2369 = vmatprep.subr.bf16.mxu1 %v2643_v0 }
 0x5ba   :  { %2371 = vmatpush3.bf16.msra.mxu1 %v2370_v45 }
 0x5bb   :  { %2372 = vmatprep.subr.bf16.mxu1 %v2643_v0 }
 0x5be   :  { %2374 = vmatpush3.bf16.msra.mxu1 %v2373_v48 }
 0x5bf   :  { %2375 = vmatprep.subr.bf16.mxu1 %v2643_v0 }
 0x5c2   :  { %2377 = vmatpush3.bf16.msra.mxu1 %v2376_v51 }
 0x5c3   :  { %2378 = vmatprep.subr.bf16.mxu1 %v2643_v0 }
 0x5c6   :  { %2380 = vmatpush3.bf16.msra.mxu1 %v2379_v13  ;;  %v2499_v13 = vpack.c.bf16 %v1251_v12, %v1250_v11 }
 0x5c7   :  { %2381 = vmatprep.subr.bf16.mxu1 %v2643_v0 }
 0x5ca   :  { %2383 = vmatpush3.bf16.msra.mxu1 %v2382_v22  ;;  %v1256_v22 = vld [vmem:[#allocation8 + $0x70] sm:$0xff] }
 0x5cb   :  { %2384 = vmatprep.subr.bf16.mxu1 %v2643_v0  ;;  %v2508_v24 = vpack.c.bf16 %v1257_v23, %v1256_v22 }
 0x5ce   :  { %2386 = vmatpush3.bf16.msra.mxu1 %v2385_v30 }
 0x5cf   :  { %2387 = vmatprep.subr.bf16.mxu1 %v2643_v0 }
 0x5d2   :  { %2389 = vmatpush3.bf16.msra.mxu1 %v2388_v37 }
 0x5d3   :  { %2414 = vmatprep.subr.bf16.mxu1 %v2643_v0 }
 0x688   :  { %v743_v53 = vpop.f32.mrb[6].mxu1 }
 0x689   :  { %v747_v54 = vadd.f32 %v743_v53, %v215_v52  ;;  %v1896_v55 = vpop.f32.mrb[7].mxu1  ;;  %v1242_v53 = vld [vmem:[#allocation8] sm:$0xff] }
 0x68a   :  { %v1244_v55 = vld [vmem:[#allocation8 + $0x10] sm:$0xff] }
 0x68b   :  { %2531 = vtanh.f32 %v747_v54  ;;  %v1243_v54 = vld [vmem:[#allocation8 + $0x8] sm:$0xff] }
 0x68c   :  { %v2487_v56 = vpack.c.bf16 %v1243_v54, %v1242_v53 }
 0x695   :  { %v2532_v62 = vpop.eup %2531 }
 0x696   :  { %1930 = vmatmul.mubr.f32.vlgmr.msra.gmra.mrb[14].mxu0 %v2532_v62  ;;  %v3037_v63 = vadd.f32 %v2532_v62, %v676_v39 }
 0x697   :  { %2392 = vmatpush3.bf16.msra.mxu0 %v3035_v59  ;;  %1999 = vmatprep.mubr.msk.f32.mxu0 %vm2644_vm0, %v2645_v1 }
 0x698   :  { %2393 = vmatprep.subr.bf16.mxu0 %v2643_v0 }
 0x69b   :  { %2395 = vmatpush3.bf16.msra.mxu0 %v3040_v2 }
 0x69c   :  { %2396 = vmatprep.subr.bf16.mxu0 %v2643_v0 }
 0x69f   :  { %2398 = vmatpush3.bf16.msra.mxu0 %v3046_v5 }
 0x6a0   :  { %2399 = vmatprep.subr.bf16.mxu0 %v2643_v0 }
 0x6a3   :  { %2401 = vmatpush3.bf16.msra.mxu0 %v3051_v10 }
 0x6a4   :  { %2402 = vmatprep.subr.bf16.mxu0 %v2643_v0 }
 0x6a7   :  { %2404 = vmatpush3.bf16.msra.mxu0 %v3055_v17 }
 0x6a8   :  { %2405 = vmatprep.subr.bf16.mxu0 %v2643_v0 }
 0x6ab   :  { %2407 = vmatpush3.bf16.msra.mxu0 %v3060_v26 }
 0x6ac   :  { %2408 = vmatprep.subr.bf16.mxu0 %v2643_v0 }
 0x6af   :  { %2410 = vmatpush3.bf16.msra.mxu0 %v3064_v31 }
 0x6b0   :  { %2411 = vmatprep.subr.bf16.mxu0 %v2643_v0 }
 0x6b3   :  { %2413 = vmatpush3.bf16.msra.mxu0 %v3069_v38 }
 0x6b4   :  { %2438 = vmatprep.subr.bf16.mxu0 %v2643_v0 }
 0x6b6   :  { %2000 = vmatmul.mubr.f32.vlgmr.msra.gmra.mrb[16].mxu0 %v2645_v1 }
 0x6b7   :  { %2440 = vmatpush3.bf16.msra.mxu0 %v3035_v59  ;;  %2069 = vmatprep.mubr.msk.f32.mxu0 %vm2644_vm0, %v2645_v1 }
 0x6b8   :  { %2441 = vmatprep.subr.bf16.mxu0 %v2643_v0 }
 0x6bb   :  { %2443 = vmatpush3.bf16.msra.mxu0 %v3040_v2 }
 0x6bc   :  { %2444 = vmatprep.subr.bf16.mxu0 %v2643_v0 }
 0x6bf   :  { %2446 = vmatpush3.bf16.msra.mxu0 %v3046_v5 }
 0x6c0   :  { %2447 = vmatprep.subr.bf16.mxu0 %v2643_v0 }
 0x6c3   :  { %2449 = vmatpush3.bf16.msra.mxu0 %v3051_v10 }
 0x6c4   :  { %2450 = vmatprep.subr.bf16.mxu0 %v2643_v0 }
 0x6c7   :  { %2452 = vmatpush3.bf16.msra.mxu0 %v3055_v17 }
 0x6c8   :  { %2453 = vmatprep.subr.bf16.mxu0 %v2643_v0 }
 0x6cb   :  { %2455 = vmatpush3.bf16.msra.mxu0 %v3060_v26 }
 0x6cc   :  { %2456 = vmatprep.subr.bf16.mxu0 %v2643_v0 }
 0x6cf   :  { %2458 = vmatpush3.bf16.msra.mxu0 %v3064_v31 }
 0x6d0   :  { %2459 = vmatprep.subr.bf16.mxu0 %v2643_v0 }
 0x6d3   :  { %2461 = vmatpush3.bf16.msra.mxu0 %v3069_v38 }
 0x6d4   :  { %2486 = vmatprep.subr.bf16.mxu0 %v2643_v0 }
 0x769   :  { %v816_v15 = vpop.f32.mrb[14].mxu0 }
 0x76a   :  { %v820_v21 = vadd.f32 %v816_v15, %v220_v9  ;;  %v1931_v28 = vpop.f32.mrb[15].mxu0 }
 0x76c   :  { %2533 = vtanh.f32 %v820_v21 }
 0x776   :  { %v2534_v34 = vpop.eup %2533 }
 0x777   :  { %v822_v39 = vadd.f32 %v2534_v34, %v3037_v63 }
 0x779   :  { %v823_v40 = vmul.f32 0.125, %v822_v39 }
 0x77b   :  { %1965 = vmatmul.mubr.f32.vlgmr.msra.gmra.mrb[8].mxu1 %v823_v40 }
 0x77c   :  { %2416 = vmatpush3.bf16.msra.mxu1 %v3035_v59  ;;  %2034 = vmatprep.mubr.msk.f32.mxu1 %vm2644_vm0, %v2645_v1 }
 0x77d   :  { %2417 = vmatprep.subr.bf16.mxu1 %v2643_v0 }
 0x780   :  { %2419 = vmatpush3.bf16.msra.mxu1 %v3040_v2 }
 0x781   :  { %2420 = vmatprep.subr.bf16.mxu1 %v2643_v0 }
 0x784   :  { %2422 = vmatpush3.bf16.msra.mxu1 %v3046_v5 }
 0x785   :  { %2423 = vmatprep.subr.bf16.mxu1 %v2643_v0 }
 0x788   :  { %2425 = vmatpush3.bf16.msra.mxu1 %v3051_v10 }
 0x789   :  { %2426 = vmatprep.subr.bf16.mxu1 %v2643_v0  ;;  %v1000_v58 = vpop.f32.mrb[16].mxu0 }
 0x78a   :  { %v2001_v8 = vpop.f32.mrb[17].mxu0 }
 0x78c   :  { %2428 = vmatpush3.bf16.msra.mxu1 %v3055_v17 }
 0x78d   :  { %2429 = vmatprep.subr.bf16.mxu1 %v2643_v0 }
 0x790   :  { %2431 = vmatpush3.bf16.msra.mxu1 %v3060_v26 }
 0x791   :  { %2432 = vmatprep.subr.bf16.mxu1 %v2643_v0 }
 0x794   :  { %2434 = vmatpush3.bf16.msra.mxu1 %v3064_v31 }
 0x795   :  { %2435 = vmatprep.subr.bf16.mxu1 %v2643_v0 }
 0x798   :  { %2437 = vmatpush3.bf16.msra.mxu1 %v3069_v38 }
 0x799   :  { %2462 = vmatprep.subr.bf16.mxu1 %v2643_v0 }
 0x84e   :  { %v913_v42 = vpop.f32.mrb[8].mxu1 }
 0x84f   :  { %v3118_v43 = vadd.f32 %v1344_v41, %v913_v42  ;;  %v1966_v44 = vpop.f32.mrb[9].mxu1 }
 0x851   :  { %v1004_v45 = vadd.f32 %v1000_v58, %v3118_v43 }
 0x853   :  { %2535 = vtanh.f32 %v1004_v45 }
 0x85d   :  { %v2536_v46 = vpop.eup %2535 }
 0x85e   :  { %1006 = vst [vmem:[#allocation2] sm:$0x1] %v2536_v46  ;;  %2035 = vmatmul.mubr.f32.vlgmr.msra.gmra.mrb[10].mxu1 %v2536_v46 }
 0x85f   :  { %2464 = vmatpush3.bf16.msra.mxu1 %v3035_v59  ;;  %2104 = vmatprep.mubr.msk.f32.mxu1 %vm2644_vm0, %v2645_v1  ;;  %v2490_v59 = vpack.c.bf16 %v1245_v57, %v1244_v55 }
 0x860   :  { %2465 = vmatprep.subr.bf16.mxu1 %v2643_v0 }
 0x863   :  { %2467 = vmatpush3.bf16.msra.mxu1 %v3040_v2 }
 0x864   :  { %2468 = vmatprep.subr.bf16.mxu1 %v2643_v0 }
 0x867   :  { %2470 = vmatpush3.bf16.msra.mxu1 %v3046_v5  ;;  %v2493_v5 = vpack.c.bf16 %v1247_v4, %v1246_v3 }
 0x868   :  { %2471 = vmatprep.subr.bf16.mxu1 %v2643_v0 }
 0x86b   :  { %2473 = vmatpush3.bf16.msra.mxu1 %v3051_v10  ;;  %v2496_v10 = vpack.c.bf16 %v1249_v7, %v1248_v6 }
 0x86c   :  { %2474 = vmatprep.subr.bf16.mxu1 %v2643_v0 }
 0x86f   :  { %2476 = vmatpush3.bf16.msra.mxu1 %v3055_v17  ;;  %v2502_v17 = vpack.c.bf16 %v1253_v16, %v1252_v14 }
 0x870   :  { %2477 = vmatprep.subr.bf16.mxu1 %v2643_v0 }
 0x873   :  { %2479 = vmatpush3.bf16.msra.mxu1 %v3060_v26 }
 0x874   :  { %2480 = vmatprep.subr.bf16.mxu1 %v2643_v0 }
 0x877   :  { %2482 = vmatpush3.bf16.msra.mxu1 %v3064_v31 }
 0x878   :  { %2483 = vmatprep.subr.bf16.mxu1 %v2643_v0 }
 0x87b   :  { %2485 = vmatpush3.bf16.msra.mxu1 %v3069_v38 }
 0x931   :  { %v1073_v47 = vpop.f32.mrb[10].mxu1 }
 0x932   :  { %v1078_v48 = vrot.slane %v1073_v47, 7  ;;  %v2036_v49 = vpop.f32.mrb[11].mxu1 }
 0x934   :  { %v1080_v50 = vadd.f32 %v1078_v48, %v3118_v43 }
 0x936   :  { %2537 = vtanh.f32 %v1080_v50 }
 0x940   :  { %v2538_v51 = vpop.eup %2537 }
 0x941   :  { %1082 = vst [vmem:[#allocation2] sm:$0x2] %v2538_v51  ;;  %v1084_v52 = vrot.slane %v2538_v51, 1 }
 0x943   :  { %2070 = vmatmul.mubr.f32.vlgmr.msra.gmra.mrb[18].mxu0 %v1084_v52 }
 0x944   :  { %2139 = vmatprep.mubr.msk.f32.mxu0 %vm2644_vm0, %v2645_v1  ;;  %2488 = vmatpush3.bf16.msra.mxu0 %v2487_v56 }
 0x945   :  { %2489 = vmatprep.subr.bf16.mxu0 %v2643_v0 }
 0x948   :  { %2491 = vmatpush3.bf16.msra.mxu0 %v2490_v59 }
 0x949   :  { %2492 = vmatprep.subr.bf16.mxu0 %v2643_v0 }
 0x94c   :  { %2494 = vmatpush3.bf16.msra.mxu0 %v2493_v5 }
 0x94d   :  { %2495 = vmatprep.subr.bf16.mxu0 %v2643_v0 }
 0x950   :  { %2497 = vmatpush3.bf16.msra.mxu0 %v2496_v10 }
 0x951   :  { %2498 = vmatprep.subr.bf16.mxu0 %v2643_v0 }
 0x954   :  { %2500 = vmatpush3.bf16.msra.mxu0 %v2499_v13 }
 0x955   :  { %2501 = vmatprep.subr.bf16.mxu0 %v2643_v0 }
 0x958   :  { %2503 = vmatpush3.bf16.msra.mxu0 %v2502_v17 }
 0x959   :  { %2504 = vmatprep.subr.bf16.mxu0 %v2643_v0 }
 0x95c   :  { %2506 = vmatpush3.bf16.msra.mxu0 %v2505_v20 }
 0x95d   :  { %2507 = vmatprep.subr.bf16.mxu0 %v2643_v0 }
 0x960   :  { %2509 = vmatpush3.bf16.msra.mxu0 %v2508_v24 }
 0xa16   :  { %v1152_v60 = vpop.f32.mrb[18].mxu0 }
 0xa17   :  { %v1157_v61 = vrot.slane %v1152_v60, 6  ;;  %v2071_v62 = vpop.f32.mrb[19].mxu0 }
 0xa19   :  { %v1159_v63 = vadd.f32 %v1157_v61, %v3118_v43 }
 0xa1b   :  { %2539 = vtanh.f32 %v1159_v63 }
 0xa25   :  { %v2540_v2 = vpop.eup %2539 }
 0xa26   :  { %1161 = vst [vmem:[#allocation2] sm:$0x4] %v2540_v2  ;;  %v1163_v1 = vrot.slane %v2540_v2, 2 }
 0xa28   :  { %2105 = vmatmul.mubr.f32.vlgmr.msra.gmra.mrb[12].mxu1 %v1163_v1 }
 0xafb   :  { %v1231_v25 = vpop.f32.mrb[12].mxu1 }
 0xafc   :  { %v1236_v26 = vrot.slane %v1231_v25, 5  ;;  %v2106_v27 = vpop.f32.mrb[13].mxu1 }
 0xafe   :  { %v1238_v29 = vadd.f32 %v1236_v26, %v3118_v43 }
 0xb00   :  { %2541 = vtanh.f32 %v1238_v29 }
 0xb0a   :  { %v2542_v30 = vpop.eup %2541 }
 0xb0b   :  { %1240 = vst [vmem:[#allocation2] sm:$0x8] %v2542_v30 }
 0xb12   :  { %v1241_v31 = vld [vmem:[#allocation2] sm:$0xff] }
 0xb13   :  { %2140 = vmatmul.mubr.f32.vlgmr.msra.gmra.mrb[20].mxu0 %v1241_v31 }
 0xbe6   :  { %v1331_v33 = vpop.f32.mrb[20].mxu0 }
 0xbe7   :  { %v1332_v35 = vadd.f32 %v1345_v32, %v1331_v33  ;;  %v2141_v36 = vpop.f32.mrb[21].mxu0 }
 0xbe9   :  { %1335 = vst [vmem:[%s3165_s9] sm:$0xff] %v1332_v35 }
 0xbea   :  { %1340 = vsyncpa [#allocation4], 1 }
 0xbeb   :  { %1341 = vsyncpa [#allocation6], 1 }
 0xbec   :  { %1342 = vsyncpa [#allocation9], 1 }

</bundles_post_ra>
